<compile_context>
chip_gen: v5e
topology: v5e:2x2
jax: 0.10.0
libtpu: 0.0.40
codegen_flags: <defaults>
</compile_context>

<pallas_src>
import jax
import jax.numpy as jnp
from jax.experimental import pallas as pl
from jax.experimental.pallas import tpu as pltpu


def _round_up(x: int, m: int) -> int:
    return ((x + m - 1) // m) * m


def _cdiv(a: int, b: int) -> int:
    return (a + b - 1) // b


def _sublane(dtype) -> int:
    # Min second-to-last-dim tile per dtype (f32: 8, bf16: 16, int8/fp8: 32).
    return {4: 8, 2: 16, 1: 32}[jnp.dtype(dtype).itemsize]


def mlp_kernel(x_ref, w1_ref, b1_ref, w2_ref, b2_ref, o_ref, acc_ref):
    k = pl.program_id(1)

    @pl.when(k == 0)
    def _init():
        acc_ref[...] = jnp.zeros_like(acc_ref)

    # fc1 for this hidden tile: (tm, K_p) @ (K_p, th) with f32 MXU accumulation.
    h = jnp.dot(x_ref[...], w1_ref[...], preferred_element_type=jnp.float32)
    h = jnp.maximum(h + b1_ref[...].astype(jnp.float32), 0.0)  # bias + ReLU (VPU)
    if h.dtype != w2_ref.dtype:
        h = h.astype(w2_ref.dtype)  # mixed-precision fc2 input (bf16 path)
    # fc2 partial contribution of this hidden tile, accumulated in f32.
    acc_ref[...] += jnp.dot(h, w2_ref[...], preferred_element_type=jnp.float32)

    @pl.when(k == pl.num_programs(1) - 1)
    def _finalize():
        o_ref[...] = (acc_ref[...] + b2_ref[...].astype(jnp.float32)).astype(o_ref.dtype)


def prepare_params(w1, b1, w2, b2, *, block_hidden=512, param_dtype=None):
    """Pad (and optionally cast) the parameters ONCE, outside the per-call path.

    w1: (input_size, hidden_size)   b1: (hidden_size,)
    w2: (hidden_size, output_size)  b2: (output_size,)
    """
    if param_dtype is not None:
        w1, b1, w2, b2 = (a.astype(param_dtype) for a in (w1, b1, w2, b2))
    K, H = w1.shape
    N = w2.shape[1]
    K_p = _round_up(K, 128)
    N_p = _round_up(N, 128)
    th = min(_round_up(block_hidden, 128), _round_up(H, 128))  # hidden tile (lane-dense)
    H_p = _round_up(H, th)
    # Zero padding is inert: padded hidden units get zero weights/bias -> relu(0)=0
    # and multiply zero rows of W2; padded input/output columns are sliced off.
    return dict(
        w1=jnp.pad(w1, ((0, K_p - K), (0, H_p - H))),
        b1=jnp.pad(b1.reshape(1, -1), ((0, 0), (0, H_p - H))),
        w2=jnp.pad(w2, ((0, H_p - H), (0, N_p - N))),
        b2=jnp.pad(b2.reshape(1, -1), ((0, 0), (0, N_p - N))),
        dims=(K, H, N, K_p, H_p, N_p, th),
    )


def simple_neural_network_padded(x, params, *, block_batch=512):
    """Hot path: only the activations are padded here."""
    K, H, N, K_p, H_p, N_p, th = params["dims"]
    w1_p, b1_p, w2_p, b2_p = params["w1"], params["b1"], params["w2"], params["b2"]

    B = x.shape[0]
    assert x.shape[1] == K
    out_dtype = x.dtype
    if x.dtype != w1_p.dtype:
        x = x.astype(w1_p.dtype)  # bf16 path: feed the MXU at full rate

    sub = _sublane(x.dtype)
    B_a = _round_up(B, sub)
    tm = min(_round_up(block_batch, sub), B_a)
    # If one tile would cover a large batch, split it so the "parallel" batch axis
    # has >=2 steps and v7x's second TensorCore gets work (no-op on v5e/v6e).
    if B_a // tm < 2 and B_a >= 256:
        tm = _round_up(_cdiv(B_a, 2), sub)
    B_p = _round_up(B_a, tm)

    x_p = jnp.pad(x, ((0, B_p - B), (0, K_p - K)))

    n_i = B_p // tm
    n_k = H_p // th
    stream_w = n_k > 1  # weight tiles change across k -> keep default double-buffering
    w_buf = None if stream_w else pl.Buffered(1)  # constant blocks: single buffer

    def spec(shape, imap, mode=None):
        if mode is None:
            return pl.BlockSpec(shape, imap)
        return pl.BlockSpec(shape, imap, pipeline_mode=mode)

    p_sz = w1_p.dtype.itemsize
    x_sz = x_p.dtype.itemsize
    o_sz = jnp.dtype(out_dtype).itemsize
    w_bufs = 2 if stream_w else 1
    vmem_est = (
        (K_p * th + th * N_p + th) * p_sz * w_bufs   # W1 / W2 / b1 tiles
        + N_p * p_sz                                 # b2 (single-buffered)
        + 2 * tm * K_p * x_sz                        # x tile (double-buffered)
        + 2 * tm * N_p * o_sz                        # out tile (double-buffered)
        + tm * N_p * 4                               # f32 accumulator scratch
        + tm * th * 4                                # live fc1 intermediate
    )
    # Explicit budget; capped at 64 MiB so it is valid on v7x as well as v5e/v6e.
    vmem_limit = int(min(max(1.3 * vmem_est, 4 << 20), 64 << 20))

    flops = 2 * B * (K * H + H * N)
    bytes_accessed = (
        x_p.size * x_sz
        + (w1_p.size + b1_p.size + w2_p.size + b2_p.size) * p_sz
        + B_p * N_p * o_sz
    )

    out_p = pl.pallas_call(
        mlp_kernel,
        out_shape=jax.ShapeDtypeStruct((B_p, N_p), out_dtype),
        grid=(n_i, n_k),
        in_specs=[
            pl.BlockSpec((tm, K_p), lambda i, k: (i, 0)),         # x: tiled along batch
            spec((K_p, th), lambda i, k: (0, k), w_buf),          # W1 column-tile
            spec((1, th), lambda i, k: (0, k), w_buf),            # b1 tile
            spec((th, N_p), lambda i, k: (k, 0), w_buf),          # W2 row-tile
            spec((1, N_p), lambda i, k: (0, 0), pl.Buffered(1)),  # b2 (constant)
        ],
        out_specs=pl.BlockSpec((tm, N_p), lambda i, k: (i, 0)),   # resident across k
        scratch_shapes=[pltpu.VMEM((tm, N_p), jnp.float32)],
        compiler_params=pltpu.CompilerParams(
            dimension_semantics=("parallel", "arbitrary"),
            vmem_limit_bytes=vmem_limit,
        ),
        cost_estimate=pl.CostEstimate(
            flops=flops, transcendentals=0, bytes_accessed=bytes_accessed),
    )(x_p, w1_p, b1_p, w2_p, b2_p)

    return out_p[:B, :N]


def simple_neural_network(x, w1, b1, w2, b2, *, block_batch=512, block_hidden=512,
                          param_dtype=None):
    """Convenience wrapper: fc1 -> relu -> fc2 (pads params inline)."""
    params = prepare_params(w1, b1, w2, b2, block_hidden=block_hidden,
                            param_dtype=param_dtype)
    return simple_neural_network_padded(x, params, block_batch=block_batch)


def reference(x, w1, b1, w2, b2):
    h = jnp.maximum(x @ w1 + b1[None, :], 0.0)
    return h @ w2 + b2[None, :]


if __name__ == "__main__":
    # Small shapes consistent with the module: batch=8, input=32, hidden=64, output=16.
    batch, input_size, hidden_size, output_size = 8, 32, 64, 16

    key = jax.random.PRNGKey(0)
    kx, kw1, kb1, kw2, kb2 = jax.random.split(key, 5)

    x = jax.random.normal(kx, (batch, input_size), dtype=jnp.float32)

    # Deterministic init mimicking nn.Linear's uniform(-1/sqrt(fan_in), 1/sqrt(fan_in)).
    bound1 = 1.0 / jnp.sqrt(jnp.float32(input_size))
    w1 = jax.random.uniform(kw1, (input_size, hidden_size), jnp.float32, -bound1, bound1)
    b1 = jax.random.uniform(kb1, (hidden_size,), jnp.float32, -bound1, bound1)

    bound2 = 1.0 / jnp.sqrt(jnp.float32(hidden_size))
    w2 = jax.random.uniform(kw2, (hidden_size, output_size), jnp.float32, -bound2, bound2)
    b2 = jax.random.uniform(kb2, (output_size,), jnp.float32, -bound2, bound2)

    # Pad/prepare params once (hoisted out of the per-call hot path), then run.
    params = prepare_params(w1, b1, w2, b2)
    out = simple_neural_network_padded(x, params)
    out = jax.block_until_ready(out)

    ref = reference(x, w1, b1, w2, b2)
    assert out.shape == (batch, output_size)
    assert jnp.allclose(out, ref, atol=1e-4, rtol=1e-4)

    print("KERNEL_OK")
</pallas_src>

<mosaic_0001>
module attributes {stable_mosaic.version = 11 : i64} {
  func.func @mlp_kernel(%arg0: i32, %arg1: i32, %arg2: memref<8x128xf32, #tpu.memory_space<vmem>>, %arg3: memref<128x128xf32, #tpu.memory_space<vmem>>, %arg4: memref<1x128xf32, #tpu.memory_space<vmem>>, %arg5: memref<128x128xf32, #tpu.memory_space<vmem>>, %arg6: memref<1x128xf32, #tpu.memory_space<vmem>>, %arg7: memref<8x128xf32, #tpu.memory_space<vmem>>, %arg8: memref<8x128xf32, #tpu.memory_space<vmem>>) attributes {dimension_semantics = [#tpu.dimension_semantics<parallel>, #tpu.dimension_semantics<arbitrary>], iteration_bounds = array<i64: 1, 1>, scalar_prefetch = 0 : i64, scratch_operands = 1 : i64, tpu.core_type = #tpu.core_type<tc>, window_params = [{transform_indices = @transform_0, window_bounds = array<i64: 8, 128>}, {pipeline_mode = #tpu.pipeline_mode<synchronous>, transform_indices = @transform_1, window_bounds = array<i64: 128, 128>}, {pipeline_mode = #tpu.pipeline_mode<synchronous>, transform_indices = @transform_2, window_bounds = array<i64: 1, 128>}, {pipeline_mode = #tpu.pipeline_mode<synchronous>, transform_indices = @transform_3, window_bounds = array<i64: 128, 128>}, {pipeline_mode = #tpu.pipeline_mode<synchronous>, transform_indices = @transform_4, window_bounds = array<i64: 1, 128>}, {transform_indices = @transform_5, window_bounds = array<i64: 8, 128>}]} {
    %c0_i32 = arith.constant 0 : i32
    %0 = arith.cmpi eq, %arg1, %c0_i32 : i32
    %1 = arith.extui %0 : i1 to i32
    %c0_i32_0 = arith.constant 0 : i32
    %2 = arith.cmpi ne, %1, %c0_i32_0 : i32
    scf.if %2 {
      %cst_16 = arith.constant 0.000000e+00 : f32
      %19 = vector.broadcast %cst_16 : f32 to vector<8x128xf32>
      %c0_17 = arith.constant 0 : index
      %c0_18 = arith.constant 0 : index
      %20 = vector.load %arg8[%c0_17, %c0_18] : memref<8x128xf32, #tpu.memory_space<vmem>>, vector<8x128xf32>
      tpu.vector_store %arg8[%c0_17, %c0_18], %19 {strides = array<i32>} : memref<8x128xf32, #tpu.memory_space<vmem>>, vector<8x128xf32>,
    } else {
    }
    %c0 = arith.constant 0 : index
    %c0_1 = arith.constant 0 : index
    %3 = vector.load %arg2[%c0, %c0_1] : memref<8x128xf32, #tpu.memory_space<vmem>>, vector<8x128xf32>
    %c0_2 = arith.constant 0 : index
    %c0_3 = arith.constant 0 : index
    %4 = vector.load %arg3[%c0_2, %c0_3] : memref<128x128xf32, #tpu.memory_space<vmem>>, vector<128x128xf32>
    %cst = arith.constant dense<0.000000e+00> : vector<8x128xf32>
    %5 = tpu.matmul %3, %4, %cst {dimension_numbers = #tpu.dot_dimension_numbers<[1], [0], [0], [1], [0, 0, 1, 1], [], []>} : vector<8x128xf32>, vector<128x128xf32>, vector<8x128xf32> -> vector<8x128xf32>
    %c0_4 = arith.constant 0 : index
    %c0_5 = arith.constant 0 : index
    %6 = vector.load %arg4[%c0_4, %c0_5] : memref<1x128xf32, #tpu.memory_space<vmem>>, vector<1x128xf32>
    %7 = vector.broadcast %6 : vector<1x128xf32> to vector<8x128xf32>
    %8 = arith.addf %5, %7 : vector<8x128xf32>
    %cst_6 = arith.constant 0.000000e+00 : f32
    %9 = vector.broadcast %cst_6 : f32 to vector<8x128xf32>
    %10 = arith.maximumf %8, %9 : vector<8x128xf32>
    %c0_7 = arith.constant 0 : index
    %c0_8 = arith.constant 0 : index
    %11 = vector.load %arg8[%c0_7, %c0_8] : memref<8x128xf32, #tpu.memory_space<vmem>>, vector<8x128xf32>
    %c0_9 = arith.constant 0 : index
    %c0_10 = arith.constant 0 : index
    %12 = vector.load %arg5[%c0_9, %c0_10] : memref<128x128xf32, #tpu.memory_space<vmem>>, vector<128x128xf32>
    %cst_11 = arith.constant dense<0.000000e+00> : vector<8x128xf32>
    %13 = tpu.matmul %10, %12, %cst_11 {dimension_numbers = #tpu.dot_dimension_numbers<[1], [0], [0], [1], [0, 0, 1, 1], [], []>} : vector<8x128xf32>, vector<128x128xf32>, vector<8x128xf32> -> vector<8x128xf32>
    %14 = arith.addf %11, %13 : vector<8x128xf32>
    %c0_12 = arith.constant 0 : index
    %c0_13 = arith.constant 0 : index
    %15 = vector.load %arg8[%c0_12, %c0_13] : memref<8x128xf32, #tpu.memory_space<vmem>>, vector<8x128xf32>
    tpu.vector_store %arg8[%c0_12, %c0_13], %14 {strides = array<i32>} : memref<8x128xf32, #tpu.memory_space<vmem>>, vector<8x128xf32>,
    %c0_i32_14 = arith.constant 0 : i32
    %16 = arith.cmpi eq, %arg1, %c0_i32_14 : i32
    %17 = arith.extui %16 : i1 to i32
    %c0_i32_15 = arith.constant 0 : i32
    %18 = arith.cmpi ne, %17, %c0_i32_15 : i32
    scf.if %18 {
      %c0_16 = arith.constant 0 : index
      %c0_17 = arith.constant 0 : index
      %19 = vector.load %arg8[%c0_16, %c0_17] : memref<8x128xf32, #tpu.memory_space<vmem>>, vector<8x128xf32>
      %c0_18 = arith.constant 0 : index
      %c0_19 = arith.constant 0 : index
      %20 = vector.load %arg6[%c0_18, %c0_19] : memref<1x128xf32, #tpu.memory_space<vmem>>, vector<1x128xf32>
      %21 = vector.broadcast %20 : vector<1x128xf32> to vector<8x128xf32>
      %22 = arith.addf %19, %21 : vector<8x128xf32>
      %c0_20 = arith.constant 0 : index
      %c0_21 = arith.constant 0 : index
      %23 = vector.load %arg7[%c0_20, %c0_21] : memref<8x128xf32, #tpu.memory_space<vmem>>, vector<8x128xf32>
      tpu.vector_store %arg7[%c0_20, %c0_21], %22 {strides = array<i32>} : memref<8x128xf32, #tpu.memory_space<vmem>>, vector<8x128xf32>,
    } else {
    }
    return
  }
  func.func @transform_0(%arg0: i32, %arg1: i32) -> (i32, i32) {
    %c0_i32 = arith.constant 0 : i32
    %c0_i32_0 = arith.constant 0 : i32
    return %arg0, %c0_i32 : i32, i32
  }
  func.func @transform_1(%arg0: i32, %arg1: i32) -> (i32, i32) {
    %c0_i32 = arith.constant 0 : i32
    %c0_i32_0 = arith.constant 0 : i32
    return %c0_i32, %arg1 : i32, i32
  }
  func.func @transform_2(%arg0: i32, %arg1: i32) -> (i32, i32) {
    %c0_i32 = arith.constant 0 : i32
    %c0_i32_0 = arith.constant 0 : i32
    return %c0_i32, %arg1 : i32, i32
  }
  func.func @transform_3(%arg0: i32, %arg1: i32) -> (i32, i32) {
    %c0_i32 = arith.constant 0 : i32
    %c0_i32_0 = arith.constant 0 : i32
    return %arg1, %c0_i32 : i32, i32
  }
  func.func @transform_4(%arg0: i32, %arg1: i32) -> (i32, i32) {
    %c0_i32 = arith.constant 0 : i32
    %c0_i32_0 = arith.constant 0 : i32
    %c0_i32_1 = arith.constant 0 : i32
    return %c0_i32, %c0_i32_0 : i32, i32
  }
  func.func @transform_5(%arg0: i32, %arg1: i32) -> (i32, i32) {
    %c0_i32 = arith.constant 0 : i32
    %c0_i32_0 = arith.constant 0 : i32
    return %arg0, %c0_i32 : i32, i32
  }
}

</mosaic_0001>

<bundles_post_ra>
// kernel: tpu_custom_call.1
= control target key start
LH: loop header
LB: loop body
LE: loop exit
PB: predicated region body
PF: predicated region fallthrough
CT: control target
= control target key end

     0   :  { %10 = vsyncpa [#allocation4], 0  ;;  %s344_s0 = inlined_call_operand.hbm [shape: f32[8,128], index: 0, kind: input, shape index: {}]   ;;  %s345_s1 = inlined_call_operand.hbm [shape: f32[128,128], index: 1, kind: input, shape index: {}]   ;;  %s346_s2 = inlined_call_operand.vmem [shape: f32[1,128], index: 2, kind: input, shape index: {}]   ;;  %s347_s3 = inlined_call_operand.hbm [shape: f32[128,128], index: 3, kind: input, shape index: {}]   ;;  %s348_s4 = inlined_call_operand.vmem [shape: f32[1,128], index: 4, kind: input, shape index: {}]   ;;  %s349_s5 = inlined_call_operand.hbm [shape: f32[8,128], index: 5, kind: output, shape index: {}]  }
   0x1   :  { %11 = vsyncpa [#allocation7], 0  ;;  %s28_s20 = sshll.u32 %s345_s1, 4  ;;  %s29_s20 = int_to_ptr.hbm [resolvable:$true] %s28_s20 }
   0x2   :  { %12 = vsyncpa [#allocation5], 0  ;;  %s290_s21 = smov [#allocation6]   ;;  %s18_s25 = sshll.u32 %s344_s0, 4  ;;  %s19_s25 = int_to_ptr.hbm [resolvable:$true] %s18_s25 }
   0x3   :  { %s30_s22 = sshll.u32 %s290_s21, 4  ;;  %s291_s26 = smov 128   ;;  %s31_s22 = int_to_ptr.vmem [resolvable:$true] %s30_s22 }
   0x4   :  { %s292_s27 = smov 8   ;;  %s293_s28 = smov [#allocation3]  }
   0x5   :  { %36 = dma.hbm_to_vmem [thread:$0]  %s29_s20, 2048, %s31_s22, [#allocation7], %s291_s26, %s291_s26, %s292_s27  }
   0x6   :  { %s20_s29 = sshll.u32 %s293_s28, 4  ;;  %s43_s7 = sshll.u32 %s347_s3, 4  ;;  %s21_s29 = int_to_ptr.vmem [resolvable:$true] %s20_s29  ;;  %s44_s7 = int_to_ptr.hbm [resolvable:$true] %s43_s7 }
   0x7   :  { %23 = dma.hbm_to_vmem [thread:$0]  %s19_s25, 128, %s21_s29, [#allocation4]  }
   0x8   :  { %s294_s1 = smov [#allocation8]  }
   0x9   :  { %s45_s8 = sshll.u32 %s294_s1, 4  ;;  %s46_s8 = int_to_ptr.vmem [resolvable:$true] %s45_s8 }
   0xa   :  { %51 = dma.hbm_to_vmem [thread:$0]  %s44_s7, 2048, %s46_s8, [#allocation7], %s291_s26, %s291_s26, %s292_s27  }
   0xb   :  { %284 = dma.done.wait [#allocation4], 128  }
   0xc   :  { %285 = vsyncadd [#allocation4], 4294967168 }
   0xd   :  { %286 = dma.done.wait [#allocation7], 4096  }
   0xe   :  { %287 = vsyncadd [#allocation7], 4294963200  ;;  %v87_v0 = vld [vmem:[#allocation6 + $0x78] sm:$0xff]  ;;  %v86_v1 = vld [vmem:[#allocation6 + $0x70] sm:$0xff]  ;;  %s295_s11 = smov [#allocation9]   ;;  %s169_s15 = sshll.u32 %s349_s5, 4  ;;  %s170_s15 = int_to_ptr.hbm [resolvable:$true] %s169_s15 }
   0xf   :  { %92 = vmatpush.msra.mxu0 %v87_v0  ;;  %v85_v2 = vld [vmem:[#allocation6 + $0x68] sm:$0xff]  ;;  %v84_v3 = vld [vmem:[#allocation6 + $0x60] sm:$0xff]  ;;  %v129_v4 = vld [vmem:[#allocation8 + $0x78] sm:$0xff]  ;;  %s167_s12 = sshll.u32 %s295_s11, 4  ;;  %s168_s12 = int_to_ptr.vmem [resolvable:$true] %s167_s12 }
  0x10   :  { %v83_v5 = vld [vmem:[#allocation6 + $0x58] sm:$0xff]  ;;  %130 = vmatpush.msra.mxu1 %v129_v4  ;;  %v128_v6 = vld [vmem:[#allocation8 + $0x70] sm:$0xff]  ;;  %v127_v7 = vld [vmem:[#allocation8 + $0x68] sm:$0xff] }
  0x11   :  { %93 = vmatpush.msra.mxu0 %v86_v1  ;;  %v82_v8 = vld [vmem:[#allocation6 + $0x50] sm:$0xff]  ;;  %v126_v9 = vld [vmem:[#allocation8 + $0x60] sm:$0xff]  ;;  %v81_v10 = vld [vmem:[#allocation6 + $0x48] sm:$0xff] }
  0x12   :  { %131 = vmatpush.msra.mxu1 %v128_v6  ;;  %v125_v11 = vld [vmem:[#allocation8 + $0x58] sm:$0xff]  ;;  %v80_v12 = vld [vmem:[#allocation6 + $0x40] sm:$0xff]  ;;  %v124_v13 = vld [vmem:[#allocation8 + $0x50] sm:$0xff] }
  0x13   :  { %94 = vmatpush.msra.mxu0 %v85_v2  ;;  %v79_v14 = vld [vmem:[#allocation6 + $0x38] sm:$0xff]  ;;  %v123_v15 = vld [vmem:[#allocation8 + $0x48] sm:$0xff]  ;;  %v78_v16 = vld [vmem:[#allocation6 + $0x30] sm:$0xff] }
  0x14   :  { %132 = vmatpush.msra.mxu1 %v127_v7  ;;  %v122_v17 = vld [vmem:[#allocation8 + $0x40] sm:$0xff]  ;;  %v77_v18 = vld [vmem:[#allocation6 + $0x28] sm:$0xff]  ;;  %v121_v19 = vld [vmem:[#allocation8 + $0x38] sm:$0xff] }
  0x15   :  { %95 = vmatpush.msra.mxu0 %v84_v3  ;;  %v76_v20 = vld [vmem:[#allocation6 + $0x20] sm:$0xff]  ;;  %v120_v21 = vld [vmem:[#allocation8 + $0x30] sm:$0xff]  ;;  %v75_v22 = vld [vmem:[#allocation6 + $0x18] sm:$0xff] }
  0x16   :  { %133 = vmatpush.msra.mxu1 %v126_v9  ;;  %v119_v23 = vld [vmem:[#allocation8 + $0x28] sm:$0xff]  ;;  %v74_v24 = vld [vmem:[#allocation6 + $0x10] sm:$0xff]  ;;  %v118_v25 = vld [vmem:[#allocation8 + $0x20] sm:$0xff] }
  0x17   :  { %96 = vmatpush.msra.mxu0 %v83_v5  ;;  %v73_v26 = vld [vmem:[#allocation6 + $0x8] sm:$0xff]  ;;  %v117_v27 = vld [vmem:[#allocation8 + $0x18] sm:$0xff]  ;;  %v72_v28 = vld [vmem:[#allocation6] sm:$0xff] }
  0x18   :  { %134 = vmatpush.msra.mxu1 %v125_v11  ;;  %v71_v29 = vld [vmem:[#allocation3] sm:$0xff]  ;;  %v116_v30 = vld [vmem:[#allocation8 + $0x10] sm:$0xff]  ;;  %v115_v31 = vld [vmem:[#allocation8 + $0x8] sm:$0xff] }
  0x19   :  { %97 = vmatpush.msra.mxu0 %v82_v8  ;;  %v114_v32 = vld [vmem:[#allocation8] sm:$0xff]  ;;  %v186_v33 = vld [vmem:[%s346_s2] ss:$0 sm:$0xff] }
  0x1a   :  { %135 = vmatpush.msra.mxu1 %v124_v13  ;;  %v187_v37 = vld [vmem:[%s348_s4] ss:$0 sm:$0xff] }
  0x1b   :  { %98 = vmatpush.msra.mxu0 %v81_v10 }
  0x1c   :  { %136 = vmatpush.msra.mxu1 %v123_v15 }
  0x1d   :  { %99 = vmatpush.msra.mxu0 %v80_v12 }
  0x1e   :  { %137 = vmatpush.msra.mxu1 %v122_v17 }
  0x1f   :  { %100 = vmatpush.msra.mxu0 %v79_v14 }
  0x20   :  { %138 = vmatpush.msra.mxu1 %v121_v19 }
  0x21   :  { %101 = vmatpush.msra.mxu0 %v78_v16 }
  0x22   :  { %139 = vmatpush.msra.mxu1 %v120_v21 }
  0x23   :  { %102 = vmatpush.msra.mxu0 %v77_v18 }
  0x24   :  { %140 = vmatpush.msra.mxu1 %v119_v23 }
  0x25   :  { %103 = vmatpush.msra.mxu0 %v76_v20 }
  0x26   :  { %141 = vmatpush.msra.mxu1 %v118_v25 }
  0x27   :  { %104 = vmatpush.msra.mxu0 %v75_v22 }
  0x28   :  { %142 = vmatpush.msra.mxu1 %v117_v27 }
  0x29   :  { %105 = vmatpush.msra.mxu0 %v74_v24 }
  0x2a   :  { %143 = vmatpush.msra.mxu1 %v116_v30 }
  0x2b   :  { %106 = vmatpush.msra.mxu0 %v73_v26 }
  0x2c   :  { %144 = vmatpush.msra.mxu1 %v115_v31 }
  0x2d   :  { %107 = vmatpush.msra.mxu0 %v72_v28 }
  0x2e   :  { %108 = vmatmul.f32.vlgmr.msra.gmra.mxu0 %v71_v29  ;;  %145 = vmatpush.msra.mxu1 %v114_v32 }
  0xab   :  { %v109_v34 = vpop.f32.mrf.mxu0 }
  0xac   :  { %v110_v35 = vadd.f32 %v186_v33, %v109_v34 }
  0xae   :  { %v112_v36 = vmax.f32 %v110_v35, 0.0 }
  0xb0   :  { %146 = vmatmul.f32.vlgmr.msra.gmra.mxu1 %v112_v36 }
 0x12d   :  { %v147_v38 = vpop.f32.mrf.mxu1 }
 0x12e   :  { %v160_v39 = vadd.f32 %v187_v37, %v147_v38 }
 0x130   :  { %161 = vst [vmem:[#allocation9] sm:$0xff] %v160_v39 }
 0x131   :  { %172 = dma.vmem_to_hbm [thread:$0]  %s168_s12, 128, %s170_s15, [#allocation5]  }
 0x132   :  { %288 = dma.done.wait [#allocation5], 128  }
 0x133   :  { %289 = vsyncadd [#allocation5], 4294967168 }
 0x134   :  { %177 = vsyncpa [#allocation4], 1 }
 0x135   :  { %178 = vsyncpa [#allocation7], 1 }
 0x136   :  { %179 = vsyncpa [#allocation5], 1 }

</bundles_post_ra>
